<compile_context>
chip_gen: v6e
topology: v6e:2x2x1
jax: 0.10.0
libtpu: 0.0.40
codegen_flags: <defaults>
</compile_context>

<pallas_src>
import functools
import math

import jax
import jax.numpy as jnp
from jax.experimental import pallas as pl
from jax.experimental.pallas import tpu as pltpu


# ----------------------- kernel 1: support = x @ W ------------------------ #

def _support_kernel(x_ref, w_ref, sup_ref):
    sup_ref[...] = jnp.dot(
        x_ref[...], w_ref[...], preferred_element_type=jnp.float32
    ).astype(sup_ref.dtype)


def _compute_support(x, weight, support_dtype):
    Np, F = x.shape
    D = weight.shape[1]
    # Largest multiple of 128 (<= 512) that divides Np.
    ts = math.gcd(Np, 512)
    grid = (Np // ts,)

    flops = 2 * Np * F * D
    bytes_accessed = (Np * F * 4 + F * D * 4
                      + Np * D * jnp.dtype(support_dtype).itemsize)

    return pl.pallas_call(
        _support_kernel,
        out_shape=jax.ShapeDtypeStruct((Np, D), support_dtype),
        grid_spec=pltpu.PrefetchScalarGridSpec(
            num_scalar_prefetch=0,
            grid=grid,
            in_specs=[
                pl.BlockSpec((ts, F), lambda i: (i, 0)),   # x row tile
                pl.BlockSpec((F, D), lambda i: (0, 0)),    # W (resident)
            ],
            out_specs=pl.BlockSpec((ts, D), lambda i: (i, 0)),
        ),
        compiler_params=pltpu.CompilerParams(
            dimension_semantics=("parallel",),
            vmem_limit_bytes=48 * 1024 * 1024,
        ),
        cost_estimate=pl.CostEstimate(flops=int(flops), transcendentals=0,
                                      bytes_accessed=int(bytes_accessed)),
    )(x, weight)


# --------------- kernel 2: out = adj @ support (+ bias) ------------------- #

def _aggregate_kernel(*refs, use_bias):
    if use_bias:
        adj_ref, sup_ref, b_ref, out_ref = refs
    else:
        adj_ref, sup_ref, out_ref = refs

    k = pl.program_id(1)

    # Output tile doubles as the f32 accumulator (block index is independent
    # of k, so it stays VMEM-resident across the whole reduction).
    @pl.when(k == 0)
    def _():
        if use_bias:
            out_ref[...] = jnp.zeros_like(out_ref) + b_ref[...]   # (1,D) bcast
        else:
            out_ref[...] = jnp.zeros_like(out_ref)

    # bf16 x bf16 on the MXU, f32 accumulation.
    out_ref[...] += jnp.dot(adj_ref[...], sup_ref[...],
                            preferred_element_type=jnp.float32)


# -------------------------------- wrapper ---------------------------------- #

def graph_convolution(x, adj, weight, bias=None, *, tm=256, tk=1024,
                      matmul_dtype=jnp.bfloat16):
    """Dense-adjacency equivalent of GraphConvolution.forward.

    adj values are cast to `matmul_dtype` (default bf16 — exact for 0/1 edge
    masks; pass matmul_dtype=jnp.float32 for arbitrarily weighted, normalized
    adjacencies if bf16 rounding is unacceptable).
    """
    N, F = x.shape
    assert weight.shape[0] == F
    D = weight.shape[1]
    assert adj.shape == (N, N)
    assert tm % 128 == 0 and tk % 128 == 0

    # Clamp tiles to the (128-rounded) problem size so tiny graphs don't force
    # huge padding, then round N up to a common multiple of both tiles.
    n128 = pl.cdiv(N, 128) * 128
    tm = min(tm, n128)
    tk = min(tk, n128)
    step = math.lcm(tm, tk)
    Np = pl.cdiv(N, step) * step

    if Np != N:
        # Padding x is cheap (O(N*F)).  Padding adj materializes an O(N^2)
        # HBM copy; prefer N a multiple of the tile sizes.
        # TODO(synk): mask the ragged last row/col tile in-kernel instead of
        # padding adj, to avoid the extra O(N^2) copy for non-multiple N.
        x = jnp.pad(x, ((0, Np - N), (0, 0)))
        adj = jnp.pad(adj, ((0, Np - N), (0, Np - N)))

    x = x.astype(jnp.float32)
    weight = weight.astype(jnp.float32)
    if adj.dtype != matmul_dtype:
        adj = adj.astype(matmul_dtype)

    # Stage 1: support = x @ W, computed exactly once (f32 math, stored in
    # matmul_dtype so the O(N^2 D / tm) re-reads in stage 2 stay cheap).
    support = _compute_support(x, weight, matmul_dtype)

    use_bias = bias is not None
    operands = [adj, support]
    in_specs = [
        # adj tile: the only operand whose block changes every grid step.
        # (If DMA latency is exposed at short nk, add pipeline_mode=
        #  pl.Buffered(3) here and re-check the VMEM budget on v7x.)
        pl.BlockSpec((tm, tk), lambda i, k: (i, k)),
        # support contraction tile (re-read once per row tile).
        pl.BlockSpec((tk, D), lambda i, k: (k, 0)),
    ]
    if use_bias:
        operands.append(bias.reshape(1, D).astype(jnp.float32))
        in_specs.append(pl.BlockSpec((1, D), lambda i, k: (0, 0)))

    grid = (Np // tm, Np // tk)
    ab = jnp.dtype(matmul_dtype).itemsize
    flops = 2 * Np * Np * D
    bytes_accessed = (Np * Np * ab                      # adj (dominant)
                      + (Np // tm) * Np * D * ab        # support re-reads
                      + Np * D * 4                      # out
                      + (D * 4 if use_bias else 0))     # bias

    out = pl.pallas_call(
        functools.partial(_aggregate_kernel, use_bias=use_bias),
        out_shape=jax.ShapeDtypeStruct((Np, D), jnp.float32),
        grid_spec=pltpu.PrefetchScalarGridSpec(
            num_scalar_prefetch=0,
            grid=grid,
            in_specs=in_specs,
            out_specs=pl.BlockSpec((tm, D), lambda i, k: (i, 0)),
        ),
        compiler_params=pltpu.CompilerParams(
            # Row tiles are independent -> parallel (megacore on v7x);
            # contraction axis is the reduction -> arbitrary, and last.
            dimension_semantics=("parallel", "arbitrary"),
            # Tile footprint is only a few MiB; 48 MiB stays under v7x's
            # 64 MiB physical VMEM and is safe on v5e/v6e (128 MiB).
            vmem_limit_bytes=48 * 1024 * 1024,
        ),
        cost_estimate=pl.CostEstimate(flops=int(flops), transcendentals=0,
                                      bytes_accessed=int(bytes_accessed)),
    )(*operands)

    return out[:N]


# ----------------------------- initialization ------------------------------ #

def init_gcn_params(key, in_features, out_features, bias=True):
    stdv = 1.0 / math.sqrt(out_features)
    k_w, k_b = jax.random.split(key)
    weight = jax.random.uniform(k_w, (in_features, out_features),
                                minval=-stdv, maxval=stdv, dtype=jnp.float32)
    b = None
    if bias:
        b = jax.random.uniform(k_b, (out_features,),
                               minval=-stdv, maxval=stdv, dtype=jnp.float32)
    return weight, b


# ---------------------------------- main ----------------------------------- #

if __name__ == "__main__":
    key = jax.random.PRNGKey(0)
    k_x, k_adj, k_param = jax.random.split(key, 3)

    N = 512             # nodes (multiple of the demo tiles -> no adj padding)
    in_features = 64
    out_features = 128  # lane-dense output block

    x = jax.random.normal(k_x, (N, in_features), dtype=jnp.float32)

    # Sparse-ish 0/1 adjacency with self loops; bf16 is exact for 0/1 and
    # halves the dominant O(N^2) HBM stream.
    rand = jax.random.uniform(k_adj, (N, N))
    adj01 = (rand < 0.05).astype(jnp.float32)
    adj01 = jnp.maximum(adj01, jnp.eye(N, dtype=jnp.float32))
    adj_bf16 = adj01.astype(jnp.bfloat16)

    weight, bias = init_gcn_params(k_param, in_features, out_features, bias=True)

    # Pure-JAX torch-semantics reference: adj @ (x @ W) + bias   (all f32)
    ref = adj01 @ (x @ weight) + bias[None, :]

    # Small demo tiles (tm=128, tk=256) so the (row, contraction) grid has
    # multiple steps on both axes; production defaults are tm=256, tk=1024.
    out = graph_convolution(x, adj_bf16, weight, bias, tm=128, tk=256)
    out = jax.block_until_ready(out)
    assert out.shape == (N, out_features)
    assert bool(jnp.all(jnp.isfinite(out)))
    # bf16 MXU operands -> ~2^-9 relative rounding of support; loose tolerance.
    assert bool(jnp.allclose(out, ref, atol=3e-2, rtol=3e-2)), \
        float(jnp.max(jnp.abs(out - ref)))

    # Exact path: f32 operands end to end (matches torch mm/spmm numerics).
    out_f32 = graph_convolution(x, adj01, weight, bias, tm=128, tk=256,
                                matmul_dtype=jnp.float32)
    out_f32 = jax.block_until_ready(out_f32)
    assert bool(jnp.allclose(out_f32, ref, atol=1e-3, rtol=1e-3)), \
        float(jnp.max(jnp.abs(out_f32 - ref)))

    # No-bias path (bias operand is dropped from the pallas_call entirely).
    out_nb = graph_convolution(x, adj_bf16, weight, None, tm=128, tk=256)
    out_nb = jax.block_until_ready(out_nb)
    ref_nb = adj01 @ (x @ weight)
    assert bool(jnp.allclose(out_nb, ref_nb, atol=3e-2, rtol=3e-2)), \
        float(jnp.max(jnp.abs(out_nb - ref_nb)))

    print("KERNEL_OK")
</pallas_src>

<mosaic_0001>
module attributes {stable_mosaic.version = 11 : i64} {
  func.func @_support_kernel(%arg0: i32, %arg1: memref<512x64xf32, #tpu.memory_space<vmem>>, %arg2: memref<64x128xf32, #tpu.memory_space<vmem>>, %arg3: memref<512x128xbf16, #tpu.memory_space<vmem>>) attributes {dimension_semantics = [#tpu.dimension_semantics<parallel>], iteration_bounds = array<i64: 1>, scalar_prefetch = 0 : i64, scratch_operands = 0 : i64, tpu.core_type = #tpu.core_type<tc>, window_params = [{transform_indices = @transform_0, window_bounds = array<i64: 512, 64>}, {pipeline_mode = #tpu.pipeline_mode<synchronous>, transform_indices = @transform_1, window_bounds = array<i64: 64, 128>}, {transform_indices = @transform_2, window_bounds = array<i64: 512, 128>}]} {
    %c0 = arith.constant 0 : index
    %c0_0 = arith.constant 0 : index
    %0 = vector.load %arg1[%c0, %c0_0] : memref<512x64xf32, #tpu.memory_space<vmem>>, vector<512x64xf32>
    %c0_1 = arith.constant 0 : index
    %c0_2 = arith.constant 0 : index
    %1 = vector.load %arg2[%c0_1, %c0_2] : memref<64x128xf32, #tpu.memory_space<vmem>>, vector<64x128xf32>
    %cst = arith.constant dense<0.000000e+00> : vector<512x128xf32>
    %2 = tpu.matmul %0, %1, %cst {dimension_numbers = #tpu.dot_dimension_numbers<[1], [0], [0], [1], [0, 0, 1, 1], [], []>} : vector<512x64xf32>, vector<64x128xf32>, vector<512x128xf32> -> vector<512x128xf32>
    %3 = arith.truncf %2 : vector<512x128xf32> to vector<512x128xbf16>
    %c0_3 = arith.constant 0 : index
    %c0_4 = arith.constant 0 : index
    %4 = vector.load %arg3[%c0_3, %c0_4] : memref<512x128xbf16, #tpu.memory_space<vmem>>, vector<512x128xbf16>
    tpu.vector_store %arg3[%c0_3, %c0_4], %3 {strides = array<i32>} : memref<512x128xbf16, #tpu.memory_space<vmem>>, vector<512x128xbf16>,
    return
  }
  func.func @transform_0(%arg0: i32) -> (i32, i32) {
    %c0_i32 = arith.constant 0 : i32
    %c0_i32_0 = arith.constant 0 : i32
    return %arg0, %c0_i32 : i32, i32
  }
  func.func @transform_1(%arg0: i32) -> (i32, i32) {
    %c0_i32 = arith.constant 0 : i32
    %c0_i32_0 = arith.constant 0 : i32
    %c0_i32_1 = arith.constant 0 : i32
    return %c0_i32, %c0_i32_0 : i32, i32
  }
  func.func @transform_2(%arg0: i32) -> (i32, i32) {
    %c0_i32 = arith.constant 0 : i32
    %c0_i32_0 = arith.constant 0 : i32
    return %arg0, %c0_i32 : i32, i32
  }
}

</mosaic_0001>

<bundles_post_ra>
// kernel: tpu_custom_call.1
= control target key start
LH: loop header
LB: loop body
LE: loop exit
PB: predicated region body
PF: predicated region fallthrough
CT: control target
= control target key end

     0   :  { %vm84_vm0 = vcmask 523264   ;;  %s1907_s0 = inlined_call_operand.vmem [shape: f32[512,64], index: 0, kind: input, shape index: {}]   ;;  %s1908_s1 = inlined_call_operand.vmem [shape: f32[64,128], index: 1, kind: input, shape index: {}]   ;;  %s1909_s2 = inlined_call_operand.hbm [shape: bf16[512,128], index: 2, kind: output, shape index: {}]  }
   0x1   :  { %v83_v0 = vld [vmem:[%s1908_s1 + $0x38] sm:$0xff]  ;;  %v82_v1 = vld [vmem:[%s1908_s1 + $0x30] sm:$0xff]  ;;  %v81_v2 = vld [vmem:[%s1908_s1 + $0x28] sm:$0xff] }
   0x2   :  { %1453 = vmatprep.subr.mxu0 %v83_v0  ;;  %1565 = vmatprep.subr.mxu1 %v83_v0  ;;  %v80_v3 = vld [vmem:[%s1908_s1 + $0x20] sm:$0xff]  ;;  %v79_v4 = vld [vmem:[%s1908_s1 + $0x18] sm:$0xff]  ;;  %v78_v5 = vld [vmem:[%s1908_s1 + $0x10] sm:$0xff] }
   0x3   :  { %1454 = vmatpush3.msra.mxu0 %v83_v0  ;;  %1573 = vmatpush3.msra.mxu1 %v83_v0  ;;  %v77_v6 = vld [vmem:[%s1908_s1 + $0x8] sm:$0xff]  ;;  %v76_v7 = vld [vmem:[%s1908_s1] sm:$0xff]  ;;  %v14_v12 = vld [vmem:[%s1907_s0 + $0x10] sm:$0xff] }
   0x4   :  { %1455 = vmatprep.subr.mxu0 %v82_v1  ;;  %1566 = vmatprep.subr.mxu1 %v82_v1  ;;  %v12_v8 = vld [vmem:[%s1907_s0] sm:$0xff]  ;;  %v13_v10 = vld [vmem:[%s1907_s0 + $0x8] sm:$0xff]  ;;  %v46_v13 = vld [vmem:[%s1907_s0 + $0x110] sm:$0xff] }
   0x5   :  { %1456 = vmatpush3.msra.mxu0 %v82_v1  ;;  %1574 = vmatpush3.msra.mxu1 %v82_v1  ;;  %v44_v9 = vld [vmem:[%s1907_s0 + $0x100] sm:$0xff]  ;;  %v45_v11 = vld [vmem:[%s1907_s0 + $0x108] sm:$0xff]  ;;  %v15_v14 = vld [vmem:[%s1907_s0 + $0x18] sm:$0xff] }
   0x6   :  { %1457 = vmatprep.subr.mxu0 %v81_v2  ;;  %1567 = vmatprep.subr.mxu1 %v81_v2  ;;  %v47_v15 = vld [vmem:[%s1907_s0 + $0x118] sm:$0xff]  ;;  %v16_v16 = vld [vmem:[%s1907_s0 + $0x20] sm:$0xff]  ;;  %v17_v18 = vld [vmem:[%s1907_s0 + $0x28] sm:$0xff] }
   0x7   :  { %1458 = vmatpush3.msra.mxu0 %v81_v2  ;;  %1575 = vmatpush3.msra.mxu1 %v81_v2  ;;  %v48_v17 = vld [vmem:[%s1907_s0 + $0x120] sm:$0xff]  ;;  %v49_v19 = vld [vmem:[%s1907_s0 + $0x128] sm:$0xff]  ;;  %v18_v20 = vld [vmem:[%s1907_s0 + $0x30] sm:$0xff] }
   0x8   :  { %1459 = vmatprep.subr.mxu0 %v80_v3  ;;  %1568 = vmatprep.subr.mxu1 %v80_v3  ;;  %v50_v21 = vld [vmem:[%s1907_s0 + $0x130] sm:$0xff] }
   0x9   :  { %1460 = vmatpush3.msra.mxu0 %v80_v3  ;;  %1576 = vmatpush3.msra.mxu1 %v80_v3 }
   0xa   :  { %1461 = vmatprep.subr.mxu0 %v79_v4  ;;  %1569 = vmatprep.subr.mxu1 %v79_v4 }
   0xb   :  { %1462 = vmatpush3.msra.mxu0 %v79_v4  ;;  %1577 = vmatpush3.msra.mxu1 %v79_v4 }
   0xc   :  { %1463 = vmatprep.subr.mxu0 %v78_v5  ;;  %1570 = vmatprep.subr.mxu1 %v78_v5 }
   0xd   :  { %1464 = vmatpush3.msra.mxu0 %v78_v5  ;;  %1578 = vmatpush3.msra.mxu1 %v78_v5 }
   0xe   :  { %1465 = vmatprep.subr.mxu0 %v77_v6  ;;  %1571 = vmatprep.subr.mxu1 %v77_v6 }
   0xf   :  { %1466 = vmatpush3.msra.mxu0 %v77_v6  ;;  %1579 = vmatpush3.msra.mxu1 %v77_v6 }
  0x10   :  { %1467 = vmatprep.subr.mxu0 %v76_v7  ;;  %1572 = vmatprep.subr.mxu1 %v76_v7 }
  0x11   :  { %1468 = vmatpush3.msra.mxu0 %v76_v7  ;;  %1580 = vmatpush3.msra.mxu1 %v76_v7 }
  0x12   :  { %1469 = vmatprep.mubr.msk.f32.mxu0 %vm84_vm0, %v12_v8  ;;  %1517 = vmatprep.mubr.msk.f32.mxu1 %vm84_vm0, %v44_v9 }
  0x13   :  { %1470 = vmatmul.mubr.msk.f32.vlgmr.msra.gmra.mxu0 %vm84_vm0, %v13_v10  ;;  %1518 = vmatmul.mubr.msk.f32.vlgmr.msra.gmra.mxu1 %vm84_vm0, %v45_v11 }
  0x14   :  { %1472 = vmatprep.mubr.msk.f32.mxu0 %vm84_vm0, %v14_v12  ;;  %1520 = vmatprep.mubr.msk.f32.mxu1 %vm84_vm0, %v46_v13 }
  0x17   :  { %1473 = vmatmul.mubr.msk.f32.gmra.mxu0 %vm84_vm0, %v15_v14  ;;  %1521 = vmatmul.mubr.msk.f32.gmra.mxu1 %vm84_vm0, %v47_v15 }
  0x18   :  { %1475 = vmatprep.mubr.msk.f32.mxu0 %vm84_vm0, %v16_v16  ;;  %1523 = vmatprep.mubr.msk.f32.mxu1 %vm84_vm0, %v48_v17 }
  0x19   :  { %7 = vsyncpa [#allocation3], 0  ;;  %v19_v22 = vld [vmem:[%s1907_s0 + $0x38] sm:$0xff]  ;;  %v20_v24 = vld [vmem:[%s1907_s0 + $0x40] sm:$0xff] }
  0x1a   :  { %v51_v23 = vld [vmem:[%s1907_s0 + $0x138] sm:$0xff]  ;;  %v52_v25 = vld [vmem:[%s1907_s0 + $0x140] sm:$0xff]  ;;  %v21_v26 = vld [vmem:[%s1907_s0 + $0x48] sm:$0xff] }
  0x1b   :  { %1476 = vmatmul.mubr.msk.f32.gmra.mxu0 %vm84_vm0, %v17_v18  ;;  %1524 = vmatmul.mubr.msk.f32.gmra.mxu1 %vm84_vm0, %v49_v19  ;;  %v53_v27 = vld [vmem:[%s1907_s0 + $0x148] sm:$0xff]  ;;  %v22_v28 = vld [vmem:[%s1907_s0 + $0x50] sm:$0xff]  ;;  %v23_v30 = vld [vmem:[%s1907_s0 + $0x58] sm:$0xff] }
  0x1c   :  { %1478 = vmatprep.mubr.msk.f32.mxu0 %vm84_vm0, %v18_v20  ;;  %1526 = vmatprep.mubr.msk.f32.mxu1 %vm84_vm0, %v50_v21  ;;  %v54_v29 = vld [vmem:[%s1907_s0 + $0x150] sm:$0xff]  ;;  %v55_v31 = vld [vmem:[%s1907_s0 + $0x158] sm:$0xff]  ;;  %v24_v32 = vld [vmem:[%s1907_s0 + $0x60] sm:$0xff] }
  0x1d   :  { %v56_v33 = vld [vmem:[%s1907_s0 + $0x160] sm:$0xff]  ;;  %v25_v34 = vld [vmem:[%s1907_s0 + $0x68] sm:$0xff]  ;;  %v26_v36 = vld [vmem:[%s1907_s0 + $0x70] sm:$0xff] }
  0x1e   :  { %v57_v35 = vld [vmem:[%s1907_s0 + $0x168] sm:$0xff]  ;;  %v58_v37 = vld [vmem:[%s1907_s0 + $0x170] sm:$0xff]  ;;  %v27_v38 = vld [vmem:[%s1907_s0 + $0x78] sm:$0xff] }
  0x1f   :  { %1479 = vmatmul.mubr.msk.f32.gmra.mxu0 %vm84_vm0, %v19_v22  ;;  %1527 = vmatmul.mubr.msk.f32.gmra.mxu1 %vm84_vm0, %v51_v23  ;;  %v59_v39 = vld [vmem:[%s1907_s0 + $0x178] sm:$0xff]  ;;  %v28_v40 = vld [vmem:[%s1907_s0 + $0x80] sm:$0xff]  ;;  %v29_v42 = vld [vmem:[%s1907_s0 + $0x88] sm:$0xff] }
  0x20   :  { %1481 = vmatprep.mubr.msk.f32.mxu0 %vm84_vm0, %v20_v24  ;;  %1529 = vmatprep.mubr.msk.f32.mxu1 %vm84_vm0, %v52_v25  ;;  %v60_v41 = vld [vmem:[%s1907_s0 + $0x180] sm:$0xff]  ;;  %v61_v43 = vld [vmem:[%s1907_s0 + $0x188] sm:$0xff]  ;;  %v30_v44 = vld [vmem:[%s1907_s0 + $0x90] sm:$0xff] }
  0x21   :  { %v62_v45 = vld [vmem:[%s1907_s0 + $0x190] sm:$0xff]  ;;  %v31_v46 = vld [vmem:[%s1907_s0 + $0x98] sm:$0xff]  ;;  %v32_v48 = vld [vmem:[%s1907_s0 + $0xa0] sm:$0xff] }
  0x22   :  { %v63_v47 = vld [vmem:[%s1907_s0 + $0x198] sm:$0xff]  ;;  %v64_v49 = vld [vmem:[%s1907_s0 + $0x1a0] sm:$0xff]  ;;  %v33_v50 = vld [vmem:[%s1907_s0 + $0xa8] sm:$0xff] }
  0x23   :  { %1482 = vmatmul.mubr.msk.f32.gmra.mxu0 %vm84_vm0, %v21_v26  ;;  %1530 = vmatmul.mubr.msk.f32.gmra.mxu1 %vm84_vm0, %v53_v27  ;;  %v65_v51 = vld [vmem:[%s1907_s0 + $0x1a8] sm:$0xff]  ;;  %v34_v52 = vld [vmem:[%s1907_s0 + $0xb0] sm:$0xff]  ;;  %v35_v54 = vld [vmem:[%s1907_s0 + $0xb8] sm:$0xff] }
  0x24   :  { %1484 = vmatprep.mubr.msk.f32.mxu0 %vm84_vm0, %v22_v28  ;;  %1532 = vmatprep.mubr.msk.f32.mxu1 %vm84_vm0, %v54_v29  ;;  %v66_v53 = vld [vmem:[%s1907_s0 + $0x1b0] sm:$0xff]  ;;  %v67_v55 = vld [vmem:[%s1907_s0 + $0x1b8] sm:$0xff]  ;;  %v36_v56 = vld [vmem:[%s1907_s0 + $0xc0] sm:$0xff] }
  0x25   :  { %v68_v57 = vld [vmem:[%s1907_s0 + $0x1c0] sm:$0xff]  ;;  %v37_v58 = vld [vmem:[%s1907_s0 + $0xc8] sm:$0xff]  ;;  %v38_v60 = vld [vmem:[%s1907_s0 + $0xd0] sm:$0xff] }
  0x26   :  { %v69_v59 = vld [vmem:[%s1907_s0 + $0x1c8] sm:$0xff]  ;;  %v70_v61 = vld [vmem:[%s1907_s0 + $0x1d0] sm:$0xff]  ;;  %v39_v62 = vld [vmem:[%s1907_s0 + $0xd8] sm:$0xff] }
  0x27   :  { %1485 = vmatmul.mubr.msk.f32.gmra.mxu0 %vm84_vm0, %v23_v30  ;;  %1533 = vmatmul.mubr.msk.f32.gmra.mxu1 %vm84_vm0, %v55_v31  ;;  %v71_v63 = vld [vmem:[%s1907_s0 + $0x1d8] sm:$0xff]  ;;  %v40_v0 = vld [vmem:[%s1907_s0 + $0xe0] sm:$0xff]  ;;  %v41_v2 = vld [vmem:[%s1907_s0 + $0xe8] sm:$0xff] }
  0x28   :  { %1487 = vmatprep.mubr.msk.f32.mxu0 %vm84_vm0, %v24_v32  ;;  %1535 = vmatprep.mubr.msk.f32.mxu1 %vm84_vm0, %v56_v33  ;;  %v72_v1 = vld [vmem:[%s1907_s0 + $0x1e0] sm:$0xff]  ;;  %v73_v3 = vld [vmem:[%s1907_s0 + $0x1e8] sm:$0xff]  ;;  %v42_v4 = vld [vmem:[%s1907_s0 + $0xf0] sm:$0xff] }
  0x29   :  { %v74_v5 = vld [vmem:[%s1907_s0 + $0x1f0] sm:$0xff]  ;;  %v43_v6 = vld [vmem:[%s1907_s0 + $0xf8] sm:$0xff] }
  0x2a   :  { %v75_v7 = vld [vmem:[%s1907_s0 + $0x1f8] sm:$0xff]  ;;  %s1606_s0 = smov [#allocation2]  }
  0x2b   :  { %1488 = vmatmul.mubr.msk.f32.gmra.mxu0 %vm84_vm0, %v25_v34  ;;  %1536 = vmatmul.mubr.msk.f32.gmra.mxu1 %vm84_vm0, %v57_v35  ;;  %s987_s8 = sshll.u32 %s1606_s0, 4  ;;  %s988_s8 = int_to_ptr.vmem [resolvable:$true] %s987_s8 }
  0x2c   :  { %1490 = vmatprep.mubr.msk.f32.mxu0 %vm84_vm0, %v26_v36  ;;  %1538 = vmatprep.mubr.msk.f32.mxu1 %vm84_vm0, %v58_v37  ;;  %s1584_s9 = scalar_lea.vmem %s988_s8, 4096  ;;  %p1589_p1 = scmp.lt.s32.totalorder %s988_s8, %s988_s8 }
  0x2d   :  { %p1585_p0 = scmp.ne.s32.totalorder %s988_s8, %s1584_s9  ;;  %p1590_p2 = scmp.lt.s32.totalorder %s1584_s9, %s1584_s9 }
  0x2f   :  { %1491 = vmatmul.mubr.msk.f32.gmra.mxu0 %vm84_vm0, %v27_v38  ;;  %1539 = vmatmul.mubr.msk.f32.gmra.mxu1 %vm84_vm0, %v59_v39  ;;  %p1591_p3 = por %p1590_p2, %p1589_p1 }
  0x30   :  { %1493 = vmatprep.mubr.msk.f32.mxu0 %vm84_vm0, %v28_v40  ;;  %1541 = vmatprep.mubr.msk.f32.mxu1 %vm84_vm0, %v60_v41 }
  0x31   :  { %p1592_p4 = pnand %p1591_p3, %p1585_p0 }
  0x33   :  { %1494 = vmatmul.mubr.msk.f32.gmra.mxu0 %vm84_vm0, %v29_v42  ;;  %1542 = vmatmul.mubr.msk.f32.gmra.mxu1 %vm84_vm0, %v61_v43 }
  0x34   :  { %1496 = vmatprep.mubr.msk.f32.mxu0 %vm84_vm0, %v30_v44  ;;  %1544 = vmatprep.mubr.msk.f32.mxu1 %vm84_vm0, %v62_v45 }
  0x37   :  { %1497 = vmatmul.mubr.msk.f32.gmra.mxu0 %vm84_vm0, %v31_v46  ;;  %1545 = vmatmul.mubr.msk.f32.gmra.mxu1 %vm84_vm0, %v63_v47 }
  0x38   :  { %1499 = vmatprep.mubr.msk.f32.mxu0 %vm84_vm0, %v32_v48  ;;  %1547 = vmatprep.mubr.msk.f32.mxu1 %vm84_vm0, %v64_v49 }
  0x3b   :  { %1500 = vmatmul.mubr.msk.f32.gmra.mxu0 %vm84_vm0, %v33_v50  ;;  %1548 = vmatmul.mubr.msk.f32.gmra.mxu1 %vm84_vm0, %v65_v51 }
  0x3c   :  { %1502 = vmatprep.mubr.msk.f32.mxu0 %vm84_vm0, %v34_v52  ;;  %1550 = vmatprep.mubr.msk.f32.mxu1 %vm84_vm0, %v66_v53 }
  0x3f   :  { %1503 = vmatmul.mubr.msk.f32.gmra.mxu0 %vm84_vm0, %v35_v54  ;;  %1551 = vmatmul.mubr.msk.f32.gmra.mxu1 %vm84_vm0, %v67_v55 }
  0x40   :  { %1505 = vmatprep.mubr.msk.f32.mxu0 %vm84_vm0, %v36_v56  ;;  %1553 = vmatprep.mubr.msk.f32.mxu1 %vm84_vm0, %v68_v57 }
  0x43   :  { %1506 = vmatmul.mubr.msk.f32.gmra.mxu0 %vm84_vm0, %v37_v58  ;;  %1554 = vmatmul.mubr.msk.f32.gmra.mxu1 %vm84_vm0, %v69_v59 }
  0x44   :  { %1508 = vmatprep.mubr.msk.f32.mxu0 %vm84_vm0, %v38_v60  ;;  %1556 = vmatprep.mubr.msk.f32.mxu1 %vm84_vm0, %v70_v61 }
  0x47   :  { %1509 = vmatmul.mubr.msk.f32.gmra.mxu0 %vm84_vm0, %v39_v62  ;;  %1557 = vmatmul.mubr.msk.f32.gmra.mxu1 %vm84_vm0, %v71_v63 }
  0x48   :  { %1511 = vmatprep.mubr.msk.f32.mxu0 %vm84_vm0, %v40_v0  ;;  %1559 = vmatprep.mubr.msk.f32.mxu1 %vm84_vm0, %v72_v1 }
  0x4b   :  { %1512 = vmatmul.mubr.msk.f32.gmra.mxu0 %vm84_vm0, %v41_v2  ;;  %1560 = vmatmul.mubr.msk.f32.gmra.mxu1 %vm84_vm0, %v73_v3 }
  0x4c   :  { %1514 = vmatprep.mubr.msk.f32.mxu0 %vm84_vm0, %v42_v4  ;;  %1562 = vmatprep.mubr.msk.f32.mxu1 %vm84_vm0, %v74_v5 }
  0x4f   :  { %1515 = vmatmul.mubr.msk.f32.gmra.mxu0 %vm84_vm0, %v43_v6  ;;  %1563 = vmatmul.mubr.msk.f32.gmra.mxu1 %vm84_vm0, %v75_v7 }
  0xd3   :  { %v1471_v8 = vpop.f32.mrf.mxu0  ;;  %v1519_v9 = vpop.f32.mrf.mxu1 }
  0xd5   :  { %v343_v10 = vpop.f32.mrf.mxu0  ;;  %v503_v11 = vpop.f32.mrf.mxu1 }
  0xd6   :  { %v1193_v12 = vpack.c.bf16 %v1471_v8, %v343_v10  ;;  %v1273_v13 = vpack.c.bf16 %v1519_v9, %v503_v11 }
  0xd7   :  { %v1474_v14 = vpop.f32.mrf.mxu0  ;;  %v1522_v15 = vpop.f32.mrf.mxu1 }
  0xd8   :  { %1194 = vst [vmem:[#allocation2] sm:$0xff] %v1193_v12   ;;  %1365 = vst [vmem:[#allocation2 + $0x80] sm:$0xff] %v1273_v13  }
  0xd9   :  { %v353_v16 = vpop.f32.mrf.mxu0  ;;  %v513_v17 = vpop.f32.mrf.mxu1 }
  0xda   :  { %v1198_v18 = vpack.c.bf16 %v1474_v14, %v353_v16  ;;  %v1278_v19 = vpack.c.bf16 %v1522_v15, %v513_v17 }
  0xdb   :  { %v1477_v20 = vpop.f32.mrf.mxu0  ;;  %v1525_v21 = vpop.f32.mrf.mxu1 }
  0xdc   :  { %1350 = vst [vmem:[#allocation2 + $0x8] sm:$0xff] %v1198_v18   ;;  %1366 = vst [vmem:[#allocation2 + $0x88] sm:$0xff] %v1278_v19  }
  0xdd   :  { %v363_v22 = vpop.f32.mrf.mxu0  ;;  %v523_v23 = vpop.f32.mrf.mxu1 }
  0xde   :  { %v1203_v24 = vpack.c.bf16 %v1477_v20, %v363_v22  ;;  %v1283_v25 = vpack.c.bf16 %v1525_v21, %v523_v23 }
  0xdf   :  { %v1480_v26 = vpop.f32.mrf.mxu0  ;;  %v1528_v27 = vpop.f32.mrf.mxu1 }
  0xe0   :  { %1351 = vst [vmem:[#allocation2 + $0x10] sm:$0xff] %v1203_v24   ;;  %1367 = vst [vmem:[#allocation2 + $0x90] sm:$0xff] %v1283_v25  }
  0xe1   :  { %v373_v28 = vpop.f32.mrf.mxu0  ;;  %v533_v29 = vpop.f32.mrf.mxu1 }
  0xe2   :  { %v1208_v30 = vpack.c.bf16 %v1480_v26, %v373_v28  ;;  %v1288_v31 = vpack.c.bf16 %v1528_v27, %v533_v29 }
  0xe3   :  { %v1483_v32 = vpop.f32.mrf.mxu0  ;;  %v1531_v33 = vpop.f32.mrf.mxu1 }
  0xe4   :  { %1352 = vst [vmem:[#allocation2 + $0x18] sm:$0xff] %v1208_v30   ;;  %1368 = vst [vmem:[#allocation2 + $0x98] sm:$0xff] %v1288_v31  }
  0xe5   :  { %v383_v34 = vpop.f32.mrf.mxu0  ;;  %v543_v35 = vpop.f32.mrf.mxu1 }
  0xe6   :  { %v1213_v36 = vpack.c.bf16 %v1483_v32, %v383_v34  ;;  %v1293_v37 = vpack.c.bf16 %v1531_v33, %v543_v35 }
  0xe7   :  { %v1486_v38 = vpop.f32.mrf.mxu0  ;;  %v1534_v39 = vpop.f32.mrf.mxu1 }
  0xe8   :  { %1353 = vst [vmem:[#allocation2 + $0x20] sm:$0xff] %v1213_v36   ;;  %1369 = vst [vmem:[#allocation2 + $0xa0] sm:$0xff] %v1293_v37  }
  0xe9   :  { %v393_v40 = vpop.f32.mrf.mxu0  ;;  %v553_v41 = vpop.f32.mrf.mxu1 }
  0xea   :  { %v1218_v42 = vpack.c.bf16 %v1486_v38, %v393_v40  ;;  %v1298_v43 = vpack.c.bf16 %v1534_v39, %v553_v41 }
  0xeb   :  { %v1489_v44 = vpop.f32.mrf.mxu0  ;;  %v1537_v45 = vpop.f32.mrf.mxu1 }
  0xec   :  { %1354 = vst [vmem:[#allocation2 + $0x28] sm:$0xff] %v1218_v42   ;;  %1370 = vst [vmem:[#allocation2 + $0xa8] sm:$0xff] %v1298_v43  }
  0xed   :  { %v403_v46 = vpop.f32.mrf.mxu0  ;;  %v563_v47 = vpop.f32.mrf.mxu1 }
  0xee   :  { %v1223_v48 = vpack.c.bf16 %v1489_v44, %v403_v46  ;;  %v1303_v49 = vpack.c.bf16 %v1537_v45, %v563_v47 }
  0xef   :  { %v1492_v50 = vpop.f32.mrf.mxu0  ;;  %v1540_v51 = vpop.f32.mrf.mxu1 }
  0xf0   :  { %1355 = vst [vmem:[#allocation2 + $0x30] sm:$0xff] %v1223_v48   ;;  %1371 = vst [vmem:[#allocation2 + $0xb0] sm:$0xff] %v1303_v49  }
  0xf1   :  { %v413_v52 = vpop.f32.mrf.mxu0  ;;  %v573_v53 = vpop.f32.mrf.mxu1 }
  0xf2   :  { %v1228_v54 = vpack.c.bf16 %v1492_v50, %v413_v52  ;;  %v1308_v55 = vpack.c.bf16 %v1540_v51, %v573_v53 }
  0xf3   :  { %v1495_v56 = vpop.f32.mrf.mxu0  ;;  %v1543_v57 = vpop.f32.mrf.mxu1 }
  0xf4   :  { %1356 = vst [vmem:[#allocation2 + $0x38] sm:$0xff] %v1228_v54   ;;  %1372 = vst [vmem:[#allocation2 + $0xb8] sm:$0xff] %v1308_v55  }
  0xf5   :  { %v423_v58 = vpop.f32.mrf.mxu0  ;;  %v583_v59 = vpop.f32.mrf.mxu1 }
  0xf6   :  { %v1233_v60 = vpack.c.bf16 %v1495_v56, %v423_v58  ;;  %v1313_v61 = vpack.c.bf16 %v1543_v57, %v583_v59 }
  0xf7   :  { %v1498_v62 = vpop.f32.mrf.mxu0  ;;  %v1546_v63 = vpop.f32.mrf.mxu1 }
  0xf8   :  { %1357 = vst [vmem:[#allocation2 + $0x40] sm:$0xff] %v1233_v60   ;;  %1373 = vst [vmem:[#allocation2 + $0xc0] sm:$0xff] %v1313_v61  }
  0xf9   :  { %v433_v0 = vpop.f32.mrf.mxu0  ;;  %v593_v1 = vpop.f32.mrf.mxu1 }
  0xfa   :  { %v1238_v2 = vpack.c.bf16 %v1498_v62, %v433_v0  ;;  %v1318_v3 = vpack.c.bf16 %v1546_v63, %v593_v1 }
  0xfb   :  { %v1501_v4 = vpop.f32.mrf.mxu0  ;;  %v1549_v5 = vpop.f32.mrf.mxu1 }
  0xfc   :  { %1358 = vst [vmem:[#allocation2 + $0x48] sm:$0xff] %v1238_v2   ;;  %1374 = vst [vmem:[#allocation2 + $0xc8] sm:$0xff] %v1318_v3  }
  0xfd   :  { %v443_v6 = vpop.f32.mrf.mxu0  ;;  %v603_v7 = vpop.f32.mrf.mxu1 }
  0xfe   :  { %v1243_v8 = vpack.c.bf16 %v1501_v4, %v443_v6  ;;  %v1323_v9 = vpack.c.bf16 %v1549_v5, %v603_v7 }
  0xff   :  { %v1504_v10 = vpop.f32.mrf.mxu0  ;;  %v1552_v11 = vpop.f32.mrf.mxu1 }
 0x100   :  { %1359 = vst [vmem:[#allocation2 + $0x50] sm:$0xff] %v1243_v8   ;;  %1375 = vst [vmem:[#allocation2 + $0xd0] sm:$0xff] %v1323_v9  }
 0x101   :  { %v453_v12 = vpop.f32.mrf.mxu0  ;;  %v613_v13 = vpop.f32.mrf.mxu1 }
 0x102   :  { %v1248_v14 = vpack.c.bf16 %v1504_v10, %v453_v12  ;;  %v1328_v15 = vpack.c.bf16 %v1552_v11, %v613_v13 }
 0x103   :  { %v1507_v16 = vpop.f32.mrf.mxu0  ;;  %v1555_v17 = vpop.f32.mrf.mxu1 }
 0x104   :  { %1360 = vst [vmem:[#allocation2 + $0x58] sm:$0xff] %v1248_v14   ;;  %1376 = vst [vmem:[#allocation2 + $0xd8] sm:$0xff] %v1328_v15  }
 0x105   :  { %v463_v18 = vpop.f32.mrf.mxu0  ;;  %v623_v19 = vpop.f32.mrf.mxu1 }
 0x106   :  { %v1253_v20 = vpack.c.bf16 %v1507_v16, %v463_v18  ;;  %v1333_v21 = vpack.c.bf16 %v1555_v17, %v623_v19 }
 0x107   :  { %v1510_v22 = vpop.f32.mrf.mxu0  ;;  %v1558_v23 = vpop.f32.mrf.mxu1 }
 0x108   :  { %1361 = vst [vmem:[#allocation2 + $0x60] sm:$0xff] %v1253_v20   ;;  %1377 = vst [vmem:[#allocation2 + $0xe0] sm:$0xff] %v1333_v21  }
 0x109   :  { %v473_v24 = vpop.f32.mrf.mxu0  ;;  %v633_v25 = vpop.f32.mrf.mxu1 }
 0x10a   :  { %v1258_v26 = vpack.c.bf16 %v1510_v22, %v473_v24  ;;  %v1338_v27 = vpack.c.bf16 %v1558_v23, %v633_v25 }
 0x10b   :  { %v1513_v28 = vpop.f32.mrf.mxu0  ;;  %v1561_v29 = vpop.f32.mrf.mxu1 }
 0x10c   :  { %1362 = vst [vmem:[#allocation2 + $0x68] sm:$0xff] %v1258_v26   ;;  %1378 = vst [vmem:[#allocation2 + $0xe8] sm:$0xff] %v1338_v27  }
 0x10d   :  { %v483_v30 = vpop.f32.mrf.mxu0  ;;  %v643_v31 = vpop.f32.mrf.mxu1 }
 0x10e   :  { %v1263_v32 = vpack.c.bf16 %v1513_v28, %v483_v30  ;;  %v1343_v33 = vpack.c.bf16 %v1561_v29, %v643_v31 }
 0x10f   :  { %v1516_v34 = vpop.f32.mrf.mxu0  ;;  %v1564_v35 = vpop.f32.mrf.mxu1 }
 0x110   :  { %1363 = vst [vmem:[#allocation2 + $0x70] sm:$0xff] %v1263_v32   ;;  %1379 = vst [vmem:[#allocation2 + $0xf0] sm:$0xff] %v1343_v33  }
 0x111   :  { %v493_v36 = vpop.f32.mrf.mxu0  ;;  %v653_v37 = vpop.f32.mrf.mxu1 }
 0x112   :  { %v1268_v38 = vpack.c.bf16 %v1516_v34, %v493_v36  ;;  %v1348_v39 = vpack.c.bf16 %v1564_v35, %v653_v37 }
 0x114   :  { %1364 = vst [vmem:[#allocation2 + $0x78] sm:$0xff] %v1268_v38   ;;  %1380 = vst [vmem:[#allocation2 + $0xf8] sm:$0xff] %v1348_v39  }
 0x115   :  { %1595 = shalt.err (!%p1592_p4)
}
 0x116   :  { %s1607_s10 = smov 64   ;;  %s1608_s11 = smov 4  }
 0x117   :  { %993 = dma.vmem_to_hbm [thread:$0]  %s988_s8, 4096, %s1909_s2, [#allocation3], %s1607_s10, %s1607_s10, %s1608_s11  }
 0x118   :  { %1604 = dma.done.wait [#allocation3], 4096  }
 0x119   :  { %1605 = vsyncadd [#allocation3], 4294963200 }
 0x11a   :  { %997 = vsyncpa [#allocation3], 1 }

</bundles_post_ra>
